<compile_context>
chip_gen: v5e
topology: v5e:2x2
jax: 0.10.0
libtpu: 0.0.40
codegen_flags: <defaults>
</compile_context>

<pallas_src>
import functools

import jax
import jax.numpy as jnp
from jax.experimental import pallas as pl
from jax.experimental.pallas import tpu as pltpu

KERNEL_SIZE = 3
PAD = 1


def _round_up(a: int, m: int) -> int:
    return (a + m - 1) // m * m


def _cnn_head_kernel(x_ref, w1_ref, b1_ref, w2_ref, b2_ref, out_ref, *,
                     group: int, c_in: int, c_pad: int, length: int,
                     chunk: int, mxu_dtype):
    """One grid step: `group` batch rows, full L, streamed in static chunks.

    x_ref  : (group, c_in, L)   input rows (caller dtype, f32)
    w1_ref : (H_pad, 3*c_pad)   fused-tap conv1 weights (mxu dtype)
    b1_ref : (H_pad, 1)         f32
    w2_ref : (3, O, H_pad)      per-tap conv2 weights (mxu dtype)
    b2_ref : (O, 1)             f32
    out_ref: (group, O, L)      lane-dense output rows
    """
    f32 = jnp.float32
    for g in range(group):
        for c0 in range(0, length, chunk):
            c1 = min(c0 + chunk, length)
            n = c1 - c0              # output columns in this chunk
            m = n + 2                # hidden columns needed: positions [c0-1, c1]

            # ---- x window covering positions [c0-2, c1+2); halo zeros in-kernel ----
            lo, hi = max(c0 - 2, 0), min(c1 + 2, length)
            xw = x_ref[g, :, lo:hi]                                  # (c_in, hi-lo)
            lz, rz = lo - (c0 - 2), (c1 + 2) - hi
            parts = []
            if lz:
                parts.append(jnp.zeros((c_in, lz), xw.dtype))
            parts.append(xw)
            if rz:
                parts.append(jnp.zeros((c_in, rz), xw.dtype))
            if len(parts) > 1:
                xw = jnp.concatenate(parts, axis=1)                  # (c_in, m+2)
            if c_pad != c_in:                                        # sublane-align rows
                xw = jnp.concatenate(
                    [xw, jnp.zeros((c_pad - c_in, m + 2), xw.dtype)], axis=0)
            xw = xw.astype(mxu_dtype)                                # real cast (bf16 opt)

            # ---- conv1: fused taps (rows ordered (tap, chan)), one deep-K matmul ----
            op1 = jnp.concatenate(
                [xw[:, 0:m], xw[:, 1:m + 1], xw[:, 2:m + 2]], axis=0)   # (3*c_pad, m)
            h = jnp.dot(w1_ref[...], op1, preferred_element_type=f32) + b1_ref[...]
            h = jnp.maximum(h, 0.0)                                  # (H_pad, m) f32

            # Hidden columns at positions -1 / L reproduce conv2's zero padding.
            # Only the first / last chunk ever has them, so interior chunks skip
            # the mask entirely (per review).
            zl, zr = c0 == 0, c1 == length
            if zl or zr:
                col = jax.lax.broadcasted_iota(jnp.int32, h.shape, 1)
                keep = (col >= (1 if zl else 0)) & (col < (m - 1 if zr else m))
                h = jnp.where(keep, h, 0.0)
            h = h.astype(mxu_dtype)

            # ---- conv2: tap-wise; lane shifts land on the tiny (O, m) outputs ----
            z0 = jnp.dot(w2_ref[0], h, preferred_element_type=f32)
            z1 = jnp.dot(w2_ref[1], h, preferred_element_type=f32)
            z2 = jnp.dot(w2_ref[2], h, preferred_element_type=f32)
            y = z0[:, 0:n] + z1[:, 1:n + 1] + z2[:, 2:n + 2] + b2_ref[...]
            out_ref[g, :, c0:c1] = y.astype(out_ref.dtype)


@functools.partial(jax.jit,
                   static_argnames=("mxu_dtype", "l_chunk", "batch_group"))
def cnn_head_forward(x, w1, b1, w2, b2, *, mxu_dtype=jnp.float32,
                     l_chunk=2048, batch_group=None):
    """x: (B, C_in, L) f32 (NCL, like the PyTorch module).

    w1: (H, C_in, 3), b1: (H,)  -- nn.Conv1d(cnn1) parameters
    w2: (O, H, 3),   b2: (O,)   -- nn.Conv1d(cnn2) parameters
    Returns (B, O, L) in x.dtype.  mxu_dtype=jnp.bfloat16 feeds bf16 operands
    to the MXU (recommended on v6e / v7x) while keeping f32 accumulation and
    elementwise math; the default f32 path is bit-faithful to the f32 module.
    """
    B, C, L = x.shape
    H, Cw, k1 = w1.shape
    O, Hw, k2 = w2.shape
    assert k1 == KERNEL_SIZE and k2 == KERNEL_SIZE and Cw == C and Hw == H

    pad_unit = 16 if mxu_dtype == jnp.bfloat16 else 8
    C_pad = _round_up(C, pad_unit)
    H_pad = _round_up(H, pad_unit)

    # Weight-only padding / repacking (tiny; x itself is never touched).
    # Fused-tap conv1 matrix: w1_m[h, k*C_pad + c] = w1[h, c, k].
    w1_p = jnp.pad(w1, ((0, H_pad - H), (0, C_pad - C), (0, 0)))
    w1_m = jnp.transpose(w1_p, (0, 2, 1)).reshape(H_pad, KERNEL_SIZE * C_pad)
    w1_m = w1_m.astype(mxu_dtype)
    b1_c = jnp.pad(b1, (0, H_pad - H)).reshape(H_pad, 1).astype(jnp.float32)
    # Per-tap conv2 matrices: w2_t[k] = w2[:, :, k] (zero-padded along H).
    w2_p = jnp.pad(w2, ((0, 0), (0, H_pad - H), (0, 0)))
    w2_t = jnp.transpose(w2_p, (2, 0, 1)).astype(mxu_dtype)         # (3, O, H_pad)
    b2_c = b2.reshape(O, 1).astype(jnp.float32)

    # L streamed in-kernel in static chunks; keep the f32 hidden block modest.
    chunk = max(1, min(l_chunk, L))
    while H_pad * (chunk + 2) * 4 > 16 * 1024 * 1024 and chunk > 128:
        chunk = max(128, chunk // 2)

    # Batch-group folding: amortize the ~600-cycle per-step overhead for many
    # short rows while keeping >= 2 grid steps (v7x has two TensorCores).
    if batch_group is None:
        target = max(1, 4096 // max(L, 1))
        G = 1
        for g in range(1, B + 1):
            if B % g == 0 and g <= target and B // g >= min(B, 2):
                G = g
    else:
        G = int(batch_group)
        assert B % G == 0
    grid = (B // G,)

    # VMEM budget (v7x: 64 MiB total) — double-buffered x/out blocks + temps.
    est = 2 * G * (C + O) * L * x.dtype.itemsize
    est += H_pad * (chunk + 2) * 4 * 2
    est += 3 * C_pad * (chunk + 4) * 4 * 2
    est += (H_pad * KERNEL_SIZE * C_pad + KERNEL_SIZE * O * H_pad + H_pad + O) * 4
    vmem_limit = int(min(48 * 1024 * 1024, max(32 * 1024 * 1024, 2 * est)))

    kernel = functools.partial(
        _cnn_head_kernel, group=G, c_in=C, c_pad=C_pad, length=L,
        chunk=chunk, mxu_dtype=mxu_dtype)

    return pl.pallas_call(
        kernel,
        out_shape=jax.ShapeDtypeStruct((B, O, L), x.dtype),
        grid=grid,
        in_specs=[
            pl.BlockSpec((G, C, L), lambda b: (b, 0, 0)),
            pl.BlockSpec((H_pad, KERNEL_SIZE * C_pad), lambda b: (0, 0)),
            pl.BlockSpec((H_pad, 1), lambda b: (0, 0)),
            pl.BlockSpec((KERNEL_SIZE, O, H_pad), lambda b: (0, 0, 0)),
            pl.BlockSpec((O, 1), lambda b: (0, 0)),
        ],
        out_specs=pl.BlockSpec((G, O, L), lambda b: (b, 0, 0)),
        compiler_params=pltpu.CompilerParams(
            dimension_semantics=("parallel",),
            vmem_limit_bytes=vmem_limit,
        ),
    )(x, w1_m, b1_c, w2_t, b2_c)


def _reference_forward(x, w1, b1, w2, b2):
    """Pure-JAX reference (lax conv) mirroring the PyTorch forward."""
    dn = jax.lax.conv_dimension_numbers(x.shape, w1.shape, ("NCH", "OIH", "NCH"))
    h = jax.lax.conv_general_dilated(x, w1, (1,), [(PAD, PAD)], dimension_numbers=dn,
                                     precision=jax.lax.Precision.HIGHEST)
    h = jnp.maximum(h + b1[None, :, None], 0.0)
    dn2 = jax.lax.conv_dimension_numbers(h.shape, w2.shape, ("NCH", "OIH", "NCH"))
    y = jax.lax.conv_general_dilated(h, w2, (1,), [(PAD, PAD)], dimension_numbers=dn2,
                                     precision=jax.lax.Precision.HIGHEST)
    return y + b2[None, :, None]


if __name__ == "__main__":
    B, C_in, L = 2, 4, 16
    H, O = 32, 1                        # hidden_channels, out_channels

    key = jax.random.PRNGKey(0)
    kx, k1, kb1, k2, kb2, kx2 = jax.random.split(key, 6)

    x = jax.random.normal(kx, (B, C_in, L), dtype=jnp.float32)
    w1 = jax.random.normal(k1, (H, C_in, KERNEL_SIZE), dtype=jnp.float32) * 0.1
    b1 = jax.random.normal(kb1, (H,), dtype=jnp.float32) * 0.1
    w2 = jax.random.normal(k2, (O, H, KERNEL_SIZE), dtype=jnp.float32) * 0.1
    b2 = jax.random.normal(kb2, (O,), dtype=jnp.float32) * 0.1

    ref = _reference_forward(x, w1, b1, w2, b2)

    # f32 MXU path (default; bit-faithful to the PyTorch f32 module)
    out = jax.block_until_ready(cnn_head_forward(x, w1, b1, w2, b2))
    assert out.shape == (B, O, L), out.shape
    assert jnp.allclose(out, ref, atol=1e-4, rtol=1e-4), \
        float(jnp.max(jnp.abs(out - ref)))

    # bf16-MXU path (recommended on v6e / v7x): bf16 operands, f32 accumulation.
    out_bf16 = jax.block_until_ready(
        cnn_head_forward(x, w1, b1, w2, b2, mxu_dtype=jnp.bfloat16))
    assert jnp.allclose(out_bf16, ref, atol=3e-2, rtol=3e-2), \
        float(jnp.max(jnp.abs(out_bf16 - ref)))

    # In-kernel L chunking (interior chunks skip the edge masks, ragged tail)
    # plus batch-group folding (B2=8 -> G=4, two grid steps).
    B2, L2 = 8, 300
    x2 = jax.random.normal(kx2, (B2, C_in, L2), dtype=jnp.float32)
    ref2 = _reference_forward(x2, w1, b1, w2, b2)
    out2 = jax.block_until_ready(
        cnn_head_forward(x2, w1, b1, w2, b2, l_chunk=128))
    assert out2.shape == (B2, O, L2), out2.shape
    assert jnp.allclose(out2, ref2, atol=1e-4, rtol=1e-4), \
        float(jnp.max(jnp.abs(out2 - ref2)))

    print("KERNEL_OK")
</pallas_src>

<mosaic_0001>
module attributes {stable_mosaic.version = 11 : i64} {
  func.func @_cnn_head_kernel(%arg0: i32, %arg1: memref<1x4x16xf32, #tpu.memory_space<vmem>>, %arg2: memref<32x24xf32, #tpu.memory_space<vmem>>, %arg3: memref<32x1xf32, #tpu.memory_space<vmem>>, %arg4: memref<3x1x32xf32, #tpu.memory_space<vmem>>, %arg5: memref<1x1xf32, #tpu.memory_space<vmem>>, %arg6: memref<1x1x16xf32, #tpu.memory_space<vmem>>) attributes {dimension_semantics = [#tpu.dimension_semantics<parallel>], iteration_bounds = array<i64: 2>, scalar_prefetch = 0 : i64, scratch_operands = 0 : i64, tpu.core_type = #tpu.core_type<tc>, window_params = [{transform_indices = @transform_0, window_bounds = array<i64: 1, 4, 16>}, {pipeline_mode = #tpu.pipeline_mode<synchronous>, transform_indices = @transform_1, window_bounds = array<i64: 32, 24>}, {pipeline_mode = #tpu.pipeline_mode<synchronous>, transform_indices = @transform_2, window_bounds = array<i64: 32, 1>}, {pipeline_mode = #tpu.pipeline_mode<synchronous>, transform_indices = @transform_3, window_bounds = array<i64: 3, 1, 32>}, {pipeline_mode = #tpu.pipeline_mode<synchronous>, transform_indices = @transform_4, window_bounds = array<i64: 1, 1>}, {transform_indices = @transform_5, window_bounds = array<i64: 1, 1, 16>}]} {
    %c0 = arith.constant 0 : index
    %c0_0 = arith.constant 0 : index
    %c0_1 = arith.constant 0 : index
    %0 = vector.load %arg1[%c0, %c0_0, %c0_1] : memref<1x4x16xf32, #tpu.memory_space<vmem>>, vector<1x4x16xf32>
    %1 = vector.shape_cast %0 : vector<1x4x16xf32> to vector<4x16xf32>
    %cst = arith.constant 0.000000e+00 : f32
    %2 = vector.broadcast %cst : f32 to vector<4x2xf32>
    %cst_2 = arith.constant 0.000000e+00 : f32
    %3 = vector.broadcast %cst_2 : f32 to vector<4x2xf32>
    %4 = tpu.concatenate %2, %1, %3 in 1 : vector<4x2xf32>, vector<4x16xf32>, vector<4x2xf32> -> vector<4x20xf32>
    %cst_3 = arith.constant 0.000000e+00 : f32
    %5 = vector.broadcast %cst_3 : f32 to vector<4x20xf32>
    %6 = tpu.concatenate %4, %5 in 0 : vector<4x20xf32>, vector<4x20xf32> -> vector<8x20xf32>
    %7 = vector.extract_strided_slice %6 {offsets = [0, 0], sizes = [8, 18], strides = [1, 1]} : vector<8x20xf32> to vector<8x18xf32>
    %8 = vector.extract_strided_slice %6 {offsets = [0, 1], sizes = [8, 18], strides = [1, 1]} : vector<8x20xf32> to vector<8x18xf32>
    %9 = vector.extract_strided_slice %6 {offsets = [0, 2], sizes = [8, 18], strides = [1, 1]} : vector<8x20xf32> to vector<8x18xf32>
    %10 = tpu.concatenate %7, %8, %9 in 0 : vector<8x18xf32>, vector<8x18xf32>, vector<8x18xf32> -> vector<24x18xf32>
    %c0_4 = arith.constant 0 : index
    %c0_5 = arith.constant 0 : index
    %11 = vector.load %arg2[%c0_4, %c0_5] : memref<32x24xf32, #tpu.memory_space<vmem>>, vector<32x24xf32>
    %cst_6 = arith.constant dense<0.000000e+00> : vector<32x18xf32>
    %12 = tpu.matmul %11, %10, %cst_6 {dimension_numbers = #tpu.dot_dimension_numbers<[1], [0], [0], [1], [0, 0, 1, 1], [], []>} : vector<32x24xf32>, vector<24x18xf32>, vector<32x18xf32> -> vector<32x18xf32>
    %c0_7 = arith.constant 0 : index
    %c0_8 = arith.constant 0 : index
    %13 = vector.load %arg3[%c0_7, %c0_8] : memref<32x1xf32, #tpu.memory_space<vmem>>, vector<32x1xf32>
    %14 = vector.broadcast %13 : vector<32x1xf32> to vector<32x18xf32>
    %15 = arith.addf %12, %14 : vector<32x18xf32>
    %cst_9 = arith.constant 0.000000e+00 : f32
    %16 = vector.broadcast %cst_9 : f32 to vector<32x18xf32>
    %17 = arith.maximumf %15, %16 : vector<32x18xf32>
    %18 = tpu.iota {dimensions = array<i32: 1>} : vector<32x18xi32>
    %c1_i32 = arith.constant 1 : i32
    %19 = vector.broadcast %c1_i32 : i32 to vector<32x18xi32>
    %20 = arith.cmpi sge, %18, %19 : vector<32x18xi32>
    %c17_i32 = arith.constant 17 : i32
    %21 = vector.broadcast %c17_i32 : i32 to vector<32x18xi32>
    %22 = arith.cmpi slt, %18, %21 : vector<32x18xi32>
    %23 = arith.andi %20, %22 : vector<32x18xi1>
    %cst_10 = arith.constant 0.000000e+00 : f32
    %24 = vector.broadcast %cst_10 : f32 to vector<32x18xf32>
    %25 = arith.select %23, %17, %24 : vector<32x18xi1>, vector<32x18xf32>
    %c0_11 = arith.constant 0 : index
    %c0_12 = arith.constant 0 : index
    %c0_13 = arith.constant 0 : index
    %26 = vector.load %arg4[%c0_11, %c0_12, %c0_13] : memref<3x1x32xf32, #tpu.memory_space<vmem>>, vector<1x1x32xf32>
    %27 = vector.shape_cast %26 : vector<1x1x32xf32> to vector<1x32xf32>
    %cst_14 = arith.constant dense<0.000000e+00> : vector<1x18xf32>
    %28 = tpu.matmul %27, %25, %cst_14 {dimension_numbers = #tpu.dot_dimension_numbers<[1], [0], [0], [1], [0, 0, 1, 1], [], []>} : vector<1x32xf32>, vector<32x18xf32>, vector<1x18xf32> -> vector<1x18xf32>
    %c1 = arith.constant 1 : index
    %c0_15 = arith.constant 0 : index
    %c0_16 = arith.constant 0 : index
    %29 = vector.load %arg4[%c1, %c0_15, %c0_16] : memref<3x1x32xf32, #tpu.memory_space<vmem>>, vector<1x1x32xf32>
    %30 = vector.shape_cast %29 : vector<1x1x32xf32> to vector<1x32xf32>
    %cst_17 = arith.constant dense<0.000000e+00> : vector<1x18xf32>
    %31 = tpu.matmul %30, %25, %cst_17 {dimension_numbers = #tpu.dot_dimension_numbers<[1], [0], [0], [1], [0, 0, 1, 1], [], []>} : vector<1x32xf32>, vector<32x18xf32>, vector<1x18xf32> -> vector<1x18xf32>
    %c2 = arith.constant 2 : index
    %c0_18 = arith.constant 0 : index
    %c0_19 = arith.constant 0 : index
    %32 = vector.load %arg4[%c2, %c0_18, %c0_19] : memref<3x1x32xf32, #tpu.memory_space<vmem>>, vector<1x1x32xf32>
    %33 = vector.shape_cast %32 : vector<1x1x32xf32> to vector<1x32xf32>
    %cst_20 = arith.constant dense<0.000000e+00> : vector<1x18xf32>
    %34 = tpu.matmul %33, %25, %cst_20 {dimension_numbers = #tpu.dot_dimension_numbers<[1], [0], [0], [1], [0, 0, 1, 1], [], []>} : vector<1x32xf32>, vector<32x18xf32>, vector<1x18xf32> -> vector<1x18xf32>
    %35 = vector.extract_strided_slice %28 {offsets = [0, 0], sizes = [1, 16], strides = [1, 1]} : vector<1x18xf32> to vector<1x16xf32>
    %36 = vector.extract_strided_slice %31 {offsets = [0, 1], sizes = [1, 16], strides = [1, 1]} : vector<1x18xf32> to vector<1x16xf32>
    %37 = arith.addf %35, %36 : vector<1x16xf32>
    %38 = vector.extract_strided_slice %34 {offsets = [0, 2], sizes = [1, 16], strides = [1, 1]} : vector<1x18xf32> to vector<1x16xf32>
    %39 = arith.addf %37, %38 : vector<1x16xf32>
    %c0_21 = arith.constant 0 : index
    %c0_22 = arith.constant 0 : index
    %40 = vector.load %arg5[%c0_21, %c0_22] : memref<1x1xf32, #tpu.memory_space<vmem>>, vector<1x1xf32>
    %41 = vector.broadcast %40 : vector<1x1xf32> to vector<1x16xf32>
    %42 = arith.addf %39, %41 : vector<1x16xf32>
    %c0_23 = arith.constant 0 : index
    %c0_24 = arith.constant 0 : index
    %c0_25 = arith.constant 0 : index
    %43 = vector.load %arg6[%c0_23, %c0_24, %c0_25] : memref<1x1x16xf32, #tpu.memory_space<vmem>>, vector<1x1x16xf32>
    %44 = vector.shape_cast %43 : vector<1x1x16xf32> to vector<1x16xf32>
    %45 = vector.shape_cast %42 : vector<1x16xf32> to vector<1x1x16xf32>
    tpu.vector_store %arg6[%c0_23, %c0_24, %c0_25], %45 {strides = array<i32>} : memref<1x1x16xf32, #tpu.memory_space<vmem>>, vector<1x1x16xf32>,
    return
  }
  func.func @transform_0(%arg0: i32) -> (i32, i32, i32) {
    %c0_i32 = arith.constant 0 : i32
    %c0_i32_0 = arith.constant 0 : i32
    %c0_i32_1 = arith.constant 0 : i32
    return %arg0, %c0_i32, %c0_i32_0 : i32, i32, i32
  }
  func.func @transform_1(%arg0: i32) -> (i32, i32) {
    %c0_i32 = arith.constant 0 : i32
    %c0_i32_0 = arith.constant 0 : i32
    %c0_i32_1 = arith.constant 0 : i32
    return %c0_i32, %c0_i32_0 : i32, i32
  }
  func.func @transform_2(%arg0: i32) -> (i32, i32) {
    %c0_i32 = arith.constant 0 : i32
    %c0_i32_0 = arith.constant 0 : i32
    %c0_i32_1 = arith.constant 0 : i32
    return %c0_i32, %c0_i32_0 : i32, i32
  }
  func.func @transform_3(%arg0: i32) -> (i32, i32, i32) {
    %c0_i32 = arith.constant 0 : i32
    %c0_i32_0 = arith.constant 0 : i32
    %c0_i32_1 = arith.constant 0 : i32
    %c0_i32_2 = arith.constant 0 : i32
    return %c0_i32, %c0_i32_0, %c0_i32_1 : i32, i32, i32
  }
  func.func @transform_4(%arg0: i32) -> (i32, i32) {
    %c0_i32 = arith.constant 0 : i32
    %c0_i32_0 = arith.constant 0 : i32
    %c0_i32_1 = arith.constant 0 : i32
    return %c0_i32, %c0_i32_0 : i32, i32
  }
  func.func @transform_5(%arg0: i32) -> (i32, i32, i32) {
    %c0_i32 = arith.constant 0 : i32
    %c0_i32_0 = arith.constant 0 : i32
    %c0_i32_1 = arith.constant 0 : i32
    return %arg0, %c0_i32, %c0_i32_0 : i32, i32, i32
  }
}

</mosaic_0001>

<bundles_post_ra>
// kernel: cnn_head_forward.1
= control target key start
LH: loop header
LB: loop body
LE: loop exit
PB: predicated region body
PF: predicated region fallthrough
CT: control target
= control target key end

     0   :  { %s821_s0 = inlined_call_operand.vmem [shape: f32[2,4,16], index: 0, kind: input, shape index: {}]   ;;  %s822_s1 = inlined_call_operand.vmem [shape: f32[32,24], index: 1, kind: input, shape index: {}]   ;;  %s823_s2 = inlined_call_operand.vmem [shape: f32[32,1], index: 2, kind: input, shape index: {}]   ;;  %s824_s3 = inlined_call_operand.vmem [shape: f32[3,1,32], index: 3, kind: input, shape index: {}]   ;;  %s825_s4 = inlined_call_operand.<no memory space> [shape: f32[1,1], index: 4, kind: input, shape index: {}]   ;;  %s826_s5 = inlined_call_operand.hbm [shape: f32[2,1,16], index: 5, kind: output, shape index: {}]  }
   0x1   :  { %v10_v0 = vstv %s825_s4 }
   0x2   :  { %11 = vst [vmem:[#allocation2] sm:$0x1] %v10_v0 }
   0x3   :  { %12 = vsyncpa [#allocation4], 0 }
   0x4   :  { %14 = vsyncpa [#allocation4 + $0x1], 0  ;;  %s667_s20 = smov 0   ;;  %s669_s21 = smov 0  }
   0x5   :  { %s671_s22 = smov 0   ;;  %s673_s23 = smov 0  }
   0x6 LB: > { %s688_s4 = sadd.s32 4294967295, %s628_s23   ;;  %s485_s24 = sadd.s32 4294967294, %s628_s23   ;;  %s628_s23 = sphi %s673_s23, %s834_s23   ;;  %s624_s22 = sphi %s671_s22, %s833_s22   ;;  %s620_s21 = sphi %s669_s21, %s832_s21   ;;  %s616_s20 = sphi %s667_s20, %s831_s20  }
   0x7   : > { %s692_s25 = sadd.s32 1, %s628_s23   ;;  %s137_s26 = sadd.s32 1, %s624_s22 }
   0x8   : > { %s134_s27 = ssub.s32 %s628_s23, %s692_s25  ;;  %p147_p0 = scmp.ne.s32.totalorder %s624_s22, %s620_s21 }
   0x9   : > { %p135_p1 = scmp.eq.s32.totalorder %s134_s27, 0  ;;  %p148_p2 = scmp.eq.s32.totalorder %s688_s4, 1 }
   0xa   : > { %p153_p3 = scmp.ne.s32.totalorder %s620_s21, %s616_s20  ;;  %p154_p4 = scmp.eq.s32.totalorder %s485_s24, 1 }
   0xb   : > { %s703_s28 = scalar_select %p135_p1, %s624_s22, %s137_s26  }
   0xc   : > { %p705_p5 = por %p148_p2, %p147_p0  ;;  %p709_p6 = por %p154_p4, %p153_p3 }
   0xd   : > { %p488_p7 = scmp.ge.s32.totalorder %s628_s23, 1  ;;  %p191_p8 = scmp.lt.s32.totalorder %s628_s23, 3 }
   0xf   : > { %p192_p9 = pnand %p488_p7, %p191_p8 }
  0x10   : > { %p217_p10 = scmp.lt.s32.totalorder (!%p192_p9), %s688_s4, 1  ;;  %s630_s11 = smov (!%p192_p9), 2  }
  0x11   : > { %195 = sbr.rel (%p192_p9) target bundleno = 671 (0x29f), region = 40  ;;  %s631_s12 = smov (!%p192_p9), 127  }
  0x12   : > { %s632_s13 = smov (!%p192_p9), 126   ;;  %s215_s26 = sand.u32 (!%p192_p9), 1, %s620_s21  }
  0x13   : > { %s216_s8 = scalar_lea.vmem (!%p192_p9), [#allocation3], %s215_s26  ;;  %s586_s15 = scalar_lea.hbm (!%p192_p9), %s826_s5, 2 }
  0x14   : > { %s428_s9 = sshll.u32 (!%p192_p9), %s216_s8, 4  ;;  %s429_s9 = int_to_ptr.vmem [resolvable:$true] %s428_s9 }
  0x16   : > { %s218_s6 = scalar_select %p217_p10, %s688_s4, 1  ;;  %vm226_vm0 = vcmask 15360   ;;  %vm228_vm1 = vcmask 146432   ;;  %vm230_vm2 = vcmask 1043456   ;;  %v243_v6 = vld [vmem:[%s823_s2] sm:$0xff]  ;;  %v246_v7 = vld [vmem:[%s823_s2 + $0x18] sm:$0xff]  ;;  %v313_v17 = vlaneseq }
  0x17   : > { %v633_v8 = vmov 0   ;;  %v245_v9 = vld [vmem:[%s823_s2 + $0x10] sm:$0xff]  ;;  %v244_v10 = vld [vmem:[%s823_s2 + $0x8] sm:$0xff]  ;;  %v239_v13 = vld [vmem:[%s822_s1] sm:$0xff]  ;;  %vm267_vm3 = vcmask 195584   ;;  %vm323_vm7 = vcmask 261120  }
  0x18   : > { %s489_s7 = sshll.u32 %s218_s6, 2  ;;  %565 = vset.pattern.permute.xlu0 %v633_v8  ;;  %563 = vset.pattern.permute.xlu1 %v633_v8  ;;  %v242_v14 = vld [vmem:[%s822_s1 + $0x18] sm:$0xff]  ;;  %v241_v15 = vld [vmem:[%s822_s1 + $0x10] sm:$0xff]  ;;  %v240_v16 = vld [vmem:[%s822_s1 + $0x8] sm:$0xff]  ;;  %v314_v20 = vand.u32 127, %v313_v17  ;;  %vm415_vm8 = vcmask 122880  }
  0x19   : > { %s220_s10 = scalar_lea.vmem %s821_s0, %s489_s7  ;;  %564 = vset.pattern.permute.xlu2 %v633_v8  ;;  %v500_v36 = vld [vmem:[%s824_s3 + $0x1] sm:$0x1]  ;;  %v506_v37 = vld [vmem:[%s824_s3 + $0x2] sm:$0x1]  ;;  %v322_v38 = vld [vmem:[%s824_s3] sm:$0x1]  ;;  %s426_s7 = scalar_lea.hbm %s826_s5, %s688_s4 }
  0x1a   : > { %v221_v1 = vld [vmem:[%s220_s10] sm:$0xf]  ;;  %259 = vperm.xlu2 %564, %v245_v9   ;;  %vm315_vm4 = vcmp.ge.s32.totalorder %v314_v20, 1  ;;  %vm316_vm5 = vcmp.lt.s32.totalorder %v314_v20, 17  ;;  %s430_s10 = sshll.u32 %s426_s7, 4  ;;  %s431_s10 = int_to_ptr.hbm [resolvable:$true] %s430_s10 }
  0x1b   : > { %223 = vrot.lane.b32.xlu0 %v221_v1, %s630_s11  ;;  %vm750_vm6 = vmand %vm315_vm4, %vm316_vm5  ;;  %v407_v41 = vld [vmem:[#allocation2] sm:$0x1] }
  0x22   : > { %254 = vperm.xlu2 %564, %v244_v10  }
  0x74   : > { %v260_v18 = vpop.permute.xlu2 %259 }
  0x7c   : > { %v255_v27 = vpop.permute.xlu2 %254 }
  0x8d   : > { %v224_v2 = vpop.permute.xlu0 %223 }
  0x8e   : > { %v227_v3 = vsel %vm226_vm0, 0.0, %v224_v2 }
  0x8f   : > { %v229_v4 = vsel %vm228_vm1, %v227_v3, 0.0 }
  0x90   : > { %v231_v5 = vsel %vm230_vm2, %v229_v4, 0.0 }
  0x91   : > { %233 = vrot.lane.b32.xlu1 %v231_v5, %s631_s12  ;;  %236 = vrot.lane.b32.xlu0 %v231_v5, %s632_s13 }
  0x99   : > { %249 = vperm.xlu0 %565, %v243_v6   ;;  %264 = vperm.xlu1 %563, %v246_v7  }
 0x103   : > { %v237_v11 = vpop.permute.xlu0 %236  ;;  %v234_v12 = vpop.permute.xlu1 %233 }
 0x104   : > { %293 = vmatpush.msra.mxu0 %v237_v11  ;;  %514 = vmatpush.msra.mxu1 %v237_v11 }
 0x105   : > { %515 = vmatpush.msra.mxu2 %v237_v11 }
 0x106   : > { %294 = vmatpush.msra.mxu0 %v234_v12  ;;  %516 = vmatpush.msra.mxu1 %v234_v12 }
 0x107   : > { %517 = vmatpush.msra.mxu2 %v234_v12 }
 0x108   : > { %490 = vmatpush.msk.msra.mxu0 %vm230_vm2, %v229_v4  ;;  %518 = vmatpush.msk.msra.mxu1 %vm230_vm2, %v229_v4 }
 0x109   : > { %519 = vmatpush.msk.msra.mxu2 %vm230_vm2, %v229_v4  ;;  %491 = vmatmul.msk.f32.vlgmr.msra.gmra.mxu0 %vm267_vm3, %v239_v13 }
 0x10a   : > { %494 = vmatmul.msk.f32.vlgmr.msra.gmra.mxu2 %vm267_vm3, %v242_v14  ;;  %493 = vmatmul.msk.f32.vlgmr.msra.gmra.mxu1 %vm267_vm3, %v241_v15 }
 0x10b   : > { %v265_v22 = vpop.permute.xlu1 %264  ;;  %v250_v28 = vpop.permute.xlu0 %249 }
 0x111   : > { %492 = vmatmul.msk.f32.gmra.mxu0 %vm267_vm3, %v240_v16 }
 0x186   : > { %v297_v19 = vpop.f32.mrf.mxu0 }
 0x187   : > { %v303_v21 = vpop.f32.mrf.mxu1  ;;  %v298_v33 = vadd.f32 %v297_v19, %v250_v28 }
 0x188   : > { %v304_v24 = vadd.f32 %v303_v21, %v260_v18 }
 0x189   : > { %v309_v35 = vmax.f32 %v298_v33, 0.0 }
 0x18a   : > { %v311_v32 = vmax.f32 %v304_v24, 0.0 }
 0x18d   : > { %v306_v23 = vpop.f32.mrf.mxu2 }
 0x18e   : > { %v307_v25 = vadd.f32 %v306_v23, %v265_v22  ;;  %v300_v26 = vpop.f32.mrf.mxu0 }
 0x18f   : > { %v301_v31 = vadd.f32 %v300_v26, %v255_v27 }
 0x190   : > { %v312_v30 = vmax.f32 %v307_v25, 0.0 }
 0x191   : > { %v310_v34 = vmax.f32 %v301_v31, 0.0 }
 0x192   : > { %495 = vmatpush.msk.msrb.mxu1 %vm750_vm6, %v312_v30  ;;  %501 = vmatpush.msk.msrb.mxu2 %vm750_vm6, %v312_v30 }
 0x193   : > { %507 = vmatpush.msk.msra.mxu3 %vm750_vm6, %v312_v30 }
 0x194   : > { %496 = vmatpush.msk.msrb.mxu1 %vm750_vm6, %v311_v32  ;;  %502 = vmatpush.msk.msrb.mxu2 %vm750_vm6, %v311_v32 }
 0x195   : > { %508 = vmatpush.msk.msra.mxu3 %vm750_vm6, %v311_v32 }
 0x196   : > { %497 = vmatpush.msk.msrb.mxu1 %vm750_vm6, %v310_v34  ;;  %503 = vmatpush.msk.msrb.mxu2 %vm750_vm6, %v310_v34 }
 0x197   : > { %509 = vmatpush.msk.msra.mxu3 %vm750_vm6, %v310_v34 }
 0x198   : > { %498 = vmatpush.msk.msrb.mxu1 %vm750_vm6, %v309_v35  ;;  %504 = vmatpush.msk.msrb.mxu2 %vm750_vm6, %v309_v35 }
 0x199   : > { %510 = vmatpush.msk.msra.mxu3 %vm750_vm6, %v309_v35  ;;  %505 = vmatmul.msk.f32.vlgmr.msrb.gmra.mxu2 %vm323_vm7, %v500_v36 }
 0x19a   : > { %511 = vmatmul.msk.f32.vlgmr.msra.gmra.mxu3 %vm323_vm7, %v506_v37  ;;  %499 = vmatmul.msk.f32.vlgmr.msrb.gmra.mxu1 %vm323_vm7, %v322_v38 }
 0x217   : > { %v344_v43 = vpop.f32.mrf.mxu1 }
 0x21c   : > { %v369_v39 = vpop.f32.mrf.mxu2 }
 0x21d   : > { %398 = vrot.lane.b32.xlu1 %v369_v39, %s631_s12  ;;  %v394_v40 = vpop.f32.mrf.mxu3  ;;  %s418_s12 = scalar_lea.sflag [#allocation4], %s215_s26 }
 0x21e   : > { %403 = vrot.lane.b32.xlu2 %v394_v40, %s632_s13  ;;  %s580_s13 = sshra.s32 %s431_s10, 4  ;;  %s581_s13 = int_to_ptr.hbm [resolvable:$true] %s580_s13 }
 0x21f   : > { %s582_s11 = scalar_lea.hbm %s581_s13, 1  ;;  %p587_p0 = scmp.lt.s32.totalorder %s581_s13, %s826_s5 }
 0x220   : > { %p583_p11 = scmp.ne.s32.totalorder %s581_s13, %s582_s11  ;;  %p588_p1 = scmp.lt.s32.totalorder %s586_s15, %s582_s11 }
 0x222   : > { %p584_p12 = pnand %p583_p11, %p705_p5  ;;  %p589_p2 = por %p588_p1, %p587_p0 }
 0x224   : > { %p585_p13 = pneg %p584_p12 }
 0x225   : > { %410 = vperm.xlu1 %563, %v407_v41  }
 0x226   : > { %p590_p3 = pnand %p589_p2, %p585_p13 }
 0x278   : > { %v404_v45 = vpop.permute.xlu2 %403 }
 0x28f   : > { %v399_v42 = vpop.permute.xlu1 %398 }
 0x290   : > { %v401_v44 = vadd.f32 %v399_v42, %v344_v43 }
 0x292   : > { %v406_v47 = vadd.f32 %v404_v45, %v401_v44 }
 0x297   : > { %v411_v46 = vpop.permute.xlu1 %410 }
 0x298   : > { %v413_v48 = vperm.slane %v411_v46, 0 }
 0x29a   : > { %v414_v49 = vadd.f32 %v413_v48, %v406_v47 }
 0x29c   : > { %416 = vst.msk [vmem:[%s216_s8] sm:$0x1] %vm415_vm8, %v414_v49 }
 0x29d   : > { %593 = shalt.err (!%p590_p3)
}
 0x29e   : > { %520 = dma.vmem_to_hbm [thread:$0]  (%p705_p5), %s429_s9, 16, %s431_s10, %s418_s12  }
 0x29f PF: > { %p526_p4 = scmp.ge.s32.totalorder %s628_s23, 2  ;;  %s442_s18 = sand.u32 1, %s616_s20  }
 0x2a0   : > { %s443_s19 = scalar_lea.sflag [#allocation4], %s442_s18 }
 0x2a1   : > { %p523_p7 = pnand %p526_p4, %p709_p6 }
 0x2a3   : > { %p524_p8 = pneg %p523_p7 }
 0x2a5   : > { %611 = dma.done.wait (%p524_p8), %s443_s19, 16  }
 0x2a6   : > { %613 = vsyncadd (%p524_p8), %s443_s19, 4294967280  ;;  %p17_p9 = scmp.ge.s32.totalorder %s692_s25, 4   ;;  %s831_s20 = smov %s620_s21 }
 0x2a7   : > { %s832_s21 = smov %s624_s22  ;;  %s833_s22 = smov %s703_s28 }
 0x2a8   : > { %s834_s23 = smov %s692_s25  ;;  %19 = sbr.rel (!%p17_p9) target bundleno = 6 (0x6), region = 77 }
 0x2ad   :  { %448 = vsyncpa [#allocation4], 1 }
 0x2ae   :  { %450 = vsyncpa [#allocation4 + $0x1], 1 }

</bundles_post_ra>
